<compile_context>
chip_gen: v5e
topology: v5e:2x2
jax: 0.10.0
libtpu: 0.0.40
codegen_flags: <defaults>
</compile_context>

<pallas_src>
import numpy as np
import jax
import jax.numpy as jnp
from jax.experimental import pallas as pl
from jax.experimental.pallas import tpu as pltpu

INPUT_SIZE = (4, 16, 16)                      # module's input_size
IN_FEATURES = int(np.prod(INPUT_SIZE))        # 1024
H1, H2, NUM_CLASSES = 256, 64, 2
BATCH = 2


# ------------------------------- Pallas kernel -------------------------------
def comet_kernel(x_ref,      # [B, IN_FEATURES]
                 w1_ref,     # [IN_FEATURES, H1]
                 b1_ref,     # [1, H1]
                 w2_ref,     # [H1, H2]
                 b2_ref,     # [1, H2]
                 w3_ref,     # [H2, NUM_CLASSES]
                 b3_ref,     # [1, NUM_CLASSES]
                 out_ref):   # [B, NUM_CLASSES]
    x = x_ref[...]
    x = jnp.where(jnp.isnan(x), jnp.zeros_like(x), x)        # x[isnan(x)] = 0
    # dropout1 -> fc1 -> relu   (dropout is identity in eval mode)
    h = jnp.dot(x, w1_ref[...], preferred_element_type=jnp.float32) + b1_ref[...]
    h = jnp.maximum(h, 0.0)
    # dropout2 -> fc2 -> relu
    h = jnp.dot(h, w2_ref[...], preferred_element_type=jnp.float32) + b2_ref[...]
    h = jnp.maximum(h, 0.0)
    # dropout1 -> fc3 -> softmax(dim=1)
    logits = jnp.dot(h, w3_ref[...], preferred_element_type=jnp.float32) + b3_ref[...]
    m = jnp.max(logits, axis=-1, keepdims=True)
    e = jnp.exp(logits - m)
    out_ref[...] = e / jnp.sum(e, axis=-1, keepdims=True)


# ------------------------------- JAX wrapper ----------------------------------
def forward_pallas(x, pk):
    """x: [B, IN_FEATURES]; pk: pre-packed params (weights already [in, out])."""
    return pl.pallas_call(
        comet_kernel,
        out_shape=jax.ShapeDtypeStruct((BATCH, NUM_CLASSES), jnp.float32),
        grid=(1,),
        in_specs=[
            pl.BlockSpec((BATCH, IN_FEATURES), lambda i: (0, 0)),
            pl.BlockSpec((IN_FEATURES, H1), lambda i: (0, 0)),
            pl.BlockSpec((1, H1), lambda i: (0, 0)),
            pl.BlockSpec((H1, H2), lambda i: (0, 0)),
            pl.BlockSpec((1, H2), lambda i: (0, 0)),
            pl.BlockSpec((H2, NUM_CLASSES), lambda i: (0, 0)),
            pl.BlockSpec((1, NUM_CLASSES), lambda i: (0, 0)),
        ],
        out_specs=pl.BlockSpec((BATCH, NUM_CLASSES), lambda i: (0, 0)),
        compiler_params=pltpu.CompilerParams(dimension_semantics=("arbitrary",)),
    )(x, pk["w1"], pk["b1"], pk["w2"], pk["b2"], pk["w3"], pk["b3"])


def pack_params(p):
    """One-time host-side packing: PyTorch Linear [out, in] -> kernel [in, out]."""
    return {
        "w1": jnp.transpose(p["fc1_w"]),            # [IN_FEATURES, H1]
        "b1": p["fc1_b"].reshape(1, H1),
        "w2": jnp.transpose(p["fc2_w"]),            # [H1, H2]
        "b2": p["fc2_b"].reshape(1, H2),
        "w3": jnp.transpose(p["fc3_w"]),            # [H2, NUM_CLASSES]
        "b3": p["fc3_b"].reshape(1, NUM_CLASSES),
    }


# ---------------------- pure-JAX reference (PyTorch semantics) -----------------
def forward_reference(x, p):
    x = jnp.where(jnp.isnan(x), 0.0, x)
    h = jnp.maximum(x @ p["fc1_w"].T + p["fc1_b"], 0.0)
    h = jnp.maximum(h @ p["fc2_w"].T + p["fc2_b"], 0.0)
    logits = h @ p["fc3_w"].T + p["fc3_b"]
    return jax.nn.softmax(logits, axis=1)


# ------------------------------- params / main ---------------------------------
def init_params(key):
    ks = jax.random.split(key, 6)
    p = {
        "fc1_w": 0.03 * jax.random.normal(ks[0], (H1, IN_FEATURES)),
        "fc1_b": 0.1 * jax.random.normal(ks[1], (H1,)),
        "fc2_w": 0.06 * jax.random.normal(ks[2], (H2, H1)),
        "fc2_b": 0.1 * jax.random.normal(ks[3], (H2,)),
        "fc3_w": 0.12 * jax.random.normal(ks[4], (NUM_CLASSES, H2)),
        "fc3_b": 0.1 * jax.random.normal(ks[5], (NUM_CLASSES,)),
    }
    return jax.tree_util.tree_map(lambda a: a.astype(jnp.float32), p)


if __name__ == "__main__":
    key = jax.random.PRNGKey(0)
    kx, kp = jax.random.split(key)
    # forward never calls self.flat, so the expected input is already flattened:
    # [B, prod(input_size)] = [2, 1024]
    x = jax.random.normal(kx, (BATCH, IN_FEATURES), dtype=jnp.float32)
    x = x.at[0, 37].set(jnp.nan)                 # exercise the NaN-clearing path
    x = x.at[1, 900].set(jnp.nan)

    params = init_params(kp)
    packed = pack_params(params)                 # packed once, reused every call

    y = forward_pallas(x, packed)
    y = jax.block_until_ready(y)

    y_ref = forward_reference(x, params)
    np.testing.assert_allclose(np.asarray(y), np.asarray(y_ref), rtol=1e-4, atol=1e-5)
    print("KERNEL_OK")
</pallas_src>

<mosaic_0001>
module attributes {stable_mosaic.version = 11 : i64} {
  func.func @comet_kernel(%arg0: i32, %arg1: memref<2x1024xf32, #tpu.memory_space<vmem>>, %arg2: memref<1024x256xf32, #tpu.memory_space<vmem>>, %arg3: memref<1x256xf32, #tpu.memory_space<vmem>>, %arg4: memref<256x64xf32, #tpu.memory_space<vmem>>, %arg5: memref<1x64xf32, #tpu.memory_space<vmem>>, %arg6: memref<64x2xf32, #tpu.memory_space<vmem>>, %arg7: memref<1x2xf32, #tpu.memory_space<vmem>>, %arg8: memref<2x2xf32, #tpu.memory_space<vmem>>) attributes {dimension_semantics = [#tpu.dimension_semantics<arbitrary>], iteration_bounds = array<i64: 1>, scalar_prefetch = 0 : i64, scratch_operands = 0 : i64, tpu.core_type = #tpu.core_type<tc>, window_params = [{pipeline_mode = #tpu.pipeline_mode<synchronous>, transform_indices = @transform_0, window_bounds = array<i64: 2, 1024>}, {pipeline_mode = #tpu.pipeline_mode<synchronous>, transform_indices = @transform_1, window_bounds = array<i64: 1024, 256>}, {pipeline_mode = #tpu.pipeline_mode<synchronous>, transform_indices = @transform_2, window_bounds = array<i64: 1, 256>}, {pipeline_mode = #tpu.pipeline_mode<synchronous>, transform_indices = @transform_3, window_bounds = array<i64: 256, 64>}, {pipeline_mode = #tpu.pipeline_mode<synchronous>, transform_indices = @transform_4, window_bounds = array<i64: 1, 64>}, {pipeline_mode = #tpu.pipeline_mode<synchronous>, transform_indices = @transform_5, window_bounds = array<i64: 64, 2>}, {pipeline_mode = #tpu.pipeline_mode<synchronous>, transform_indices = @transform_6, window_bounds = array<i64: 1, 2>}, {pipeline_mode = #tpu.pipeline_mode<synchronous>, transform_indices = @transform_7, window_bounds = array<i64: 2, 2>}]} {
    %c0 = arith.constant 0 : index
    %c0_0 = arith.constant 0 : index
    %0 = vector.load %arg1[%c0, %c0_0] : memref<2x1024xf32, #tpu.memory_space<vmem>>, vector<2x1024xf32>
    %1 = arith.cmpf one, %0, %0 : vector<2x1024xf32>
    %cst = arith.constant 0.000000e+00 : f32
    %2 = vector.broadcast %cst : f32 to vector<2x1024xf32>
    %3 = arith.select %1, %2, %0 : vector<2x1024xi1>, vector<2x1024xf32>
    %c0_1 = arith.constant 0 : index
    %c0_2 = arith.constant 0 : index
    %4 = vector.load %arg2[%c0_1, %c0_2] : memref<1024x256xf32, #tpu.memory_space<vmem>>, vector<1024x256xf32>
    %cst_3 = arith.constant dense<0.000000e+00> : vector<2x256xf32>
    %5 = tpu.matmul %3, %4, %cst_3 {dimension_numbers = #tpu.dot_dimension_numbers<[1], [0], [0], [1], [0, 0, 1, 1], [], []>} : vector<2x1024xf32>, vector<1024x256xf32>, vector<2x256xf32> -> vector<2x256xf32>
    %c0_4 = arith.constant 0 : index
    %c0_5 = arith.constant 0 : index
    %6 = vector.load %arg3[%c0_4, %c0_5] : memref<1x256xf32, #tpu.memory_space<vmem>>, vector<1x256xf32>
    %7 = vector.broadcast %6 : vector<1x256xf32> to vector<2x256xf32>
    %8 = arith.addf %5, %7 : vector<2x256xf32>
    %cst_6 = arith.constant 0.000000e+00 : f32
    %9 = vector.broadcast %cst_6 : f32 to vector<2x256xf32>
    %10 = arith.maximumf %8, %9 : vector<2x256xf32>
    %c0_7 = arith.constant 0 : index
    %c0_8 = arith.constant 0 : index
    %11 = vector.load %arg4[%c0_7, %c0_8] : memref<256x64xf32, #tpu.memory_space<vmem>>, vector<256x64xf32>
    %cst_9 = arith.constant dense<0.000000e+00> : vector<2x64xf32>
    %12 = tpu.matmul %10, %11, %cst_9 {dimension_numbers = #tpu.dot_dimension_numbers<[1], [0], [0], [1], [0, 0, 1, 1], [], []>} : vector<2x256xf32>, vector<256x64xf32>, vector<2x64xf32> -> vector<2x64xf32>
    %c0_10 = arith.constant 0 : index
    %c0_11 = arith.constant 0 : index
    %13 = vector.load %arg5[%c0_10, %c0_11] : memref<1x64xf32, #tpu.memory_space<vmem>>, vector<1x64xf32>
    %14 = vector.broadcast %13 : vector<1x64xf32> to vector<2x64xf32>
    %15 = arith.addf %12, %14 : vector<2x64xf32>
    %cst_12 = arith.constant 0.000000e+00 : f32
    %16 = vector.broadcast %cst_12 : f32 to vector<2x64xf32>
    %17 = arith.maximumf %15, %16 : vector<2x64xf32>
    %c0_13 = arith.constant 0 : index
    %c0_14 = arith.constant 0 : index
    %18 = vector.load %arg6[%c0_13, %c0_14] : memref<64x2xf32, #tpu.memory_space<vmem>>, vector<64x2xf32>
    %cst_15 = arith.constant dense<0.000000e+00> : vector<2x2xf32>
    %19 = tpu.matmul %17, %18, %cst_15 {dimension_numbers = #tpu.dot_dimension_numbers<[1], [0], [0], [1], [0, 0, 1, 1], [], []>} : vector<2x64xf32>, vector<64x2xf32>, vector<2x2xf32> -> vector<2x2xf32>
    %c0_16 = arith.constant 0 : index
    %c0_17 = arith.constant 0 : index
    %20 = vector.load %arg7[%c0_16, %c0_17] : memref<1x2xf32, #tpu.memory_space<vmem>>, vector<1x2xf32>
    %21 = vector.broadcast %20 : vector<1x2xf32> to vector<2x2xf32>
    %22 = arith.addf %19, %21 : vector<2x2xf32>
    %cst_18 = arith.constant dense<0xFF800000> : vector<2xf32>
    %23 = vector.multi_reduction <maximumf>, %22, %cst_18 [1] : vector<2x2xf32> to vector<2xf32>
    %24 = vector.shape_cast %23 : vector<2xf32> to vector<2x1xf32>
    %25 = vector.broadcast %24 : vector<2x1xf32> to vector<2x2xf32>
    %26 = arith.subf %22, %25 : vector<2x2xf32>
    %27 = math.exp %26 : vector<2x2xf32>
    %cst_19 = arith.constant dense<0.000000e+00> : vector<2xf32>
    %28 = vector.multi_reduction <add>, %27, %cst_19 [1] : vector<2x2xf32> to vector<2xf32>
    %29 = vector.shape_cast %28 : vector<2xf32> to vector<2x1xf32>
    %30 = vector.broadcast %29 : vector<2x1xf32> to vector<2x2xf32>
    %31 = arith.divf %27, %30 : vector<2x2xf32>
    %c0_20 = arith.constant 0 : index
    %c0_21 = arith.constant 0 : index
    %32 = vector.load %arg8[%c0_20, %c0_21] : memref<2x2xf32, #tpu.memory_space<vmem>>, vector<2x2xf32>
    tpu.vector_store %arg8[%c0_20, %c0_21], %31 {strides = array<i32>} : memref<2x2xf32, #tpu.memory_space<vmem>>, vector<2x2xf32>,
    return
  }
  func.func @transform_0(%arg0: i32) -> (i32, i32) {
    %c0_i32 = arith.constant 0 : i32
    %c0_i32_0 = arith.constant 0 : i32
    %c0_i32_1 = arith.constant 0 : i32
    return %c0_i32, %c0_i32_0 : i32, i32
  }
  func.func @transform_1(%arg0: i32) -> (i32, i32) {
    %c0_i32 = arith.constant 0 : i32
    %c0_i32_0 = arith.constant 0 : i32
    %c0_i32_1 = arith.constant 0 : i32
    return %c0_i32, %c0_i32_0 : i32, i32
  }
  func.func @transform_2(%arg0: i32) -> (i32, i32) {
    %c0_i32 = arith.constant 0 : i32
    %c0_i32_0 = arith.constant 0 : i32
    %c0_i32_1 = arith.constant 0 : i32
    return %c0_i32, %c0_i32_0 : i32, i32
  }
  func.func @transform_3(%arg0: i32) -> (i32, i32) {
    %c0_i32 = arith.constant 0 : i32
    %c0_i32_0 = arith.constant 0 : i32
    %c0_i32_1 = arith.constant 0 : i32
    return %c0_i32, %c0_i32_0 : i32, i32
  }
  func.func @transform_4(%arg0: i32) -> (i32, i32) {
    %c0_i32 = arith.constant 0 : i32
    %c0_i32_0 = arith.constant 0 : i32
    %c0_i32_1 = arith.constant 0 : i32
    return %c0_i32, %c0_i32_0 : i32, i32
  }
  func.func @transform_5(%arg0: i32) -> (i32, i32) {
    %c0_i32 = arith.constant 0 : i32
    %c0_i32_0 = arith.constant 0 : i32
    %c0_i32_1 = arith.constant 0 : i32
    return %c0_i32, %c0_i32_0 : i32, i32
  }
  func.func @transform_6(%arg0: i32) -> (i32, i32) {
    %c0_i32 = arith.constant 0 : i32
    %c0_i32_0 = arith.constant 0 : i32
    %c0_i32_1 = arith.constant 0 : i32
    return %c0_i32, %c0_i32_0 : i32, i32
  }
  func.func @transform_7(%arg0: i32) -> (i32, i32) {
    %c0_i32 = arith.constant 0 : i32
    %c0_i32_0 = arith.constant 0 : i32
    %c0_i32_1 = arith.constant 0 : i32
    return %c0_i32, %c0_i32_0 : i32, i32
  }
}

</mosaic_0001>

<bundles_post_ra>
// kernel: tpu_custom_call.1
= control target key start
LH: loop header
LB: loop body
LE: loop exit
PB: predicated region body
PF: predicated region fallthrough
CT: control target
= control target key end

     0   :  { %12 = vsyncpa [#allocation3], 0  ;;  %s1093_s0 = inlined_call_operand.vmem [shape: f32[2,1024], index: 0, kind: input, shape index: {}]   ;;  %s1094_s1 = inlined_call_operand.hbm [shape: f32[1024,256], index: 1, kind: input, shape index: {}]   ;;  %s1095_s2 = inlined_call_operand.vmem [shape: f32[1,256], index: 2, kind: input, shape index: {}]   ;;  %s1096_s3 = inlined_call_operand.vmem [shape: f32[256,64], index: 3, kind: input, shape index: {}]   ;;  %s1097_s4 = inlined_call_operand.vmem [shape: f32[1,64], index: 4, kind: input, shape index: {}]   ;;  %s1098_s5 = inlined_call_operand.vmem [shape: f32[64,2], index: 5, kind: input, shape index: {}]   ;;  %s1099_s6 = inlined_call_operand.vmem [shape: f32[1,2], index: 6, kind: input, shape index: {}]   ;;  %s1100_s7 = inlined_call_operand.hbm [shape: f32[2,2], index: 7, kind: output, shape index: {}]  }
   0x1   :  { %13 = vsyncpa [#allocation4], 0  ;;  %s20_s26 = sshll.u32 %s1094_s1, 4  ;;  %s873_s27 = smov [#allocation2]   ;;  %s21_s26 = int_to_ptr.hbm [resolvable:$true] %s20_s26 }
   0x2   :  { %s22_s28 = sshll.u32 %s873_s27, 4  ;;  %s874_s29 = smov 256   ;;  %s23_s28 = int_to_ptr.vmem [resolvable:$true] %s22_s28 }
   0x3   :  { %s875_s30 = smov 16  }
   0x4   :  { %28 = dma.hbm_to_vmem [thread:$0]  %s21_s26, 32768, %s23_s28, [#allocation3], %s874_s29, %s874_s29, %s875_s30  }
   0x5   :  { %869 = dma.done.wait [#allocation3], 32768  }
   0x6   :  { %870 = vsyncadd [#allocation3], 4294934528  ;;  %v143_v0 = vld [vmem:[#allocation2 + $0x2f0] sm:$0xff]  ;;  %v141_v2 = vld [vmem:[#allocation2 + $0x2e0] sm:$0xff]  ;;  %vm743_vm2 = vcmask 523264   ;;  %vm767_vm3 = vcmask 9216  }
   0x7   :  { %v79_v1 = vld [vmem:[#allocation2 + $0xf0] sm:$0xff]  ;;  %372 = vmatpush.msra.mxu2 %v143_v0  ;;  %v77_v4 = vld [vmem:[#allocation2 + $0xe0] sm:$0xff]  ;;  %s800_s19 = sshll.u32 %s1100_s7, 4  ;;  %s801_s19 = int_to_ptr.hbm [resolvable:$true] %s800_s19 }
   0x8   :  { %332 = vmatpush.msra.mxu0 %v79_v1  ;;  %v175_v3 = vld [vmem:[#allocation2 + $0x3f0] sm:$0xff]  ;;  %v173_v7 = vld [vmem:[#allocation2 + $0x3e0] sm:$0xff] }
   0x9   :  { %v111_v5 = vld [vmem:[#allocation2 + $0x1f0] sm:$0xff]  ;;  %392 = vmatpush.msra.mxu3 %v175_v3  ;;  %373 = vmatpush.msra.mxu2 %v141_v2  ;;  %v109_v9 = vld [vmem:[#allocation2 + $0x1e0] sm:$0xff] }
   0xa   :  { %352 = vmatpush.msra.mxu1 %v111_v5  ;;  %v139_v6 = vld [vmem:[#allocation2 + $0x2d0] sm:$0xff]  ;;  %333 = vmatpush.msra.mxu0 %v77_v4  ;;  %v137_v11 = vld [vmem:[#allocation2 + $0x2c0] sm:$0xff] }
   0xb   :  { %v75_v8 = vld [vmem:[#allocation2 + $0xd0] sm:$0xff]  ;;  %393 = vmatpush.msra.mxu3 %v173_v7  ;;  %v73_v12 = vld [vmem:[#allocation2 + $0xc0] sm:$0xff]  ;;  %374 = vmatpush.msra.mxu2 %v139_v6 }
   0xc   :  { %v171_v10 = vld [vmem:[#allocation2 + $0x3d0] sm:$0xff]  ;;  %353 = vmatpush.msra.mxu1 %v109_v9  ;;  %334 = vmatpush.msra.mxu0 %v75_v8  ;;  %v169_v14 = vld [vmem:[#allocation2 + $0x3c0] sm:$0xff] }
   0xd   :  { %v107_v13 = vld [vmem:[#allocation2 + $0x1d0] sm:$0xff]  ;;  %v105_v15 = vld [vmem:[#allocation2 + $0x1c0] sm:$0xff]  ;;  %394 = vmatpush.msra.mxu3 %v171_v10  ;;  %375 = vmatpush.msra.mxu2 %v137_v11 }
   0xe   :  { %354 = vmatpush.msra.mxu1 %v107_v13  ;;  %v135_v16 = vld [vmem:[#allocation2 + $0x2b0] sm:$0xff]  ;;  %335 = vmatpush.msra.mxu0 %v73_v12  ;;  %v133_v20 = vld [vmem:[#allocation2 + $0x2a0] sm:$0xff] }
   0xf   :  { %v71_v17 = vld [vmem:[#allocation2 + $0xb0] sm:$0xff]  ;;  %395 = vmatpush.msra.mxu3 %v169_v14  ;;  %v69_v21 = vld [vmem:[#allocation2 + $0xa0] sm:$0xff]  ;;  %376 = vmatpush.msra.mxu2 %v135_v16 }
  0x10   :  { %v167_v18 = vld [vmem:[#allocation2 + $0x3b0] sm:$0xff]  ;;  %355 = vmatpush.msra.mxu1 %v105_v15  ;;  %336 = vmatpush.msra.mxu0 %v71_v17  ;;  %v165_v22 = vld [vmem:[#allocation2 + $0x3a0] sm:$0xff] }
  0x11   :  { %v103_v19 = vld [vmem:[#allocation2 + $0x1b0] sm:$0xff]  ;;  %v101_v23 = vld [vmem:[#allocation2 + $0x1a0] sm:$0xff]  ;;  %396 = vmatpush.msra.mxu3 %v167_v18  ;;  %377 = vmatpush.msra.mxu2 %v133_v20 }
  0x12   :  { %356 = vmatpush.msra.mxu1 %v103_v19  ;;  %v131_v24 = vld [vmem:[#allocation2 + $0x290] sm:$0xff]  ;;  %337 = vmatpush.msra.mxu0 %v69_v21  ;;  %v129_v28 = vld [vmem:[#allocation2 + $0x280] sm:$0xff] }
  0x13   :  { %v67_v25 = vld [vmem:[#allocation2 + $0x90] sm:$0xff]  ;;  %397 = vmatpush.msra.mxu3 %v165_v22  ;;  %v65_v29 = vld [vmem:[#allocation2 + $0x80] sm:$0xff]  ;;  %378 = vmatpush.msra.mxu2 %v131_v24  ;;  %v43_v24 = vld [vmem:[%s1093_s0] sm:$0xff] }
  0x14   :  { %v163_v26 = vld [vmem:[#allocation2 + $0x390] sm:$0xff]  ;;  %357 = vmatpush.msra.mxu1 %v101_v23  ;;  %338 = vmatpush.msra.mxu0 %v67_v25  ;;  %v161_v30 = vld [vmem:[#allocation2 + $0x380] sm:$0xff]  ;;  %vm45_vm0 = vcmp.ne.f32.partialorder %v43_v24, %v43_v24 }
  0x15   :  { %v99_v27 = vld [vmem:[#allocation2 + $0x190] sm:$0xff]  ;;  %v97_v31 = vld [vmem:[#allocation2 + $0x180] sm:$0xff]  ;;  %398 = vmatpush.msra.mxu3 %v163_v26  ;;  %379 = vmatpush.msra.mxu2 %v129_v28 }
  0x16   :  { %358 = vmatpush.msra.mxu1 %v99_v27  ;;  %v127_v32 = vld [vmem:[#allocation2 + $0x270] sm:$0xff]  ;;  %339 = vmatpush.msra.mxu0 %v65_v29  ;;  %v125_v36 = vld [vmem:[#allocation2 + $0x260] sm:$0xff]  ;;  %v47_v29 = vsel %vm45_vm0, 0.0, %v43_v24  ;;  %v170_v24 = vld [vmem:[#allocation2 + $0x3c8] sm:$0xff] }
  0x17   :  { %v63_v33 = vld [vmem:[#allocation2 + $0x70] sm:$0xff]  ;;  %399 = vmatpush.msra.mxu3 %v161_v30  ;;  %v61_v37 = vld [vmem:[#allocation2 + $0x60] sm:$0xff]  ;;  %380 = vmatpush.msra.mxu2 %v127_v32  ;;  %313 = vst [vmem:[#allocation1] ss:$4 sm:$0xff] %v47_v29  ;;  %v134_v29 = vld [vmem:[#allocation2 + $0x2a8] sm:$0xff] }
  0x18   :  { %v159_v34 = vld [vmem:[#allocation2 + $0x370] sm:$0xff]  ;;  %359 = vmatpush.msra.mxu1 %v97_v31  ;;  %340 = vmatpush.msra.mxu0 %v63_v33  ;;  %v157_v38 = vld [vmem:[#allocation2 + $0x360] sm:$0xff] }
  0x19   :  { %v95_v35 = vld [vmem:[#allocation2 + $0x170] sm:$0xff]  ;;  %v93_v39 = vld [vmem:[#allocation2 + $0x160] sm:$0xff]  ;;  %400 = vmatpush.msra.mxu3 %v159_v34  ;;  %381 = vmatpush.msra.mxu2 %v125_v36 }
  0x1a   :  { %360 = vmatpush.msra.mxu1 %v95_v35  ;;  %v123_v40 = vld [vmem:[#allocation2 + $0x250] sm:$0xff]  ;;  %341 = vmatpush.msra.mxu0 %v61_v37  ;;  %v121_v44 = vld [vmem:[#allocation2 + $0x240] sm:$0xff] }
  0x1b   :  { %v59_v41 = vld [vmem:[#allocation2 + $0x50] sm:$0xff]  ;;  %401 = vmatpush.msra.mxu3 %v157_v38  ;;  %v57_v45 = vld [vmem:[#allocation2 + $0x40] sm:$0xff]  ;;  %382 = vmatpush.msra.mxu2 %v123_v40 }
  0x1c   :  { %v155_v42 = vld [vmem:[#allocation2 + $0x350] sm:$0xff]  ;;  %361 = vmatpush.msra.mxu1 %v93_v39  ;;  %342 = vmatpush.msra.mxu0 %v59_v41  ;;  %v153_v46 = vld [vmem:[#allocation2 + $0x340] sm:$0xff] }
  0x1d   :  { %v91_v43 = vld [vmem:[#allocation2 + $0x150] sm:$0xff]  ;;  %v89_v47 = vld [vmem:[#allocation2 + $0x140] sm:$0xff]  ;;  %402 = vmatpush.msra.mxu3 %v155_v42  ;;  %383 = vmatpush.msra.mxu2 %v121_v44 }
  0x1e   :  { %362 = vmatpush.msra.mxu1 %v91_v43  ;;  %v119_v48 = vld [vmem:[#allocation2 + $0x230] sm:$0xff]  ;;  %343 = vmatpush.msra.mxu0 %v57_v45  ;;  %v117_v52 = vld [vmem:[#allocation2 + $0x220] sm:$0xff] }
  0x1f   :  { %v55_v49 = vld [vmem:[#allocation2 + $0x30] sm:$0xff]  ;;  %403 = vmatpush.msra.mxu3 %v153_v46  ;;  %v53_v53 = vld [vmem:[#allocation2 + $0x20] sm:$0xff]  ;;  %384 = vmatpush.msra.mxu2 %v119_v48 }
  0x20   :  { %v151_v50 = vld [vmem:[#allocation2 + $0x330] sm:$0xff]  ;;  %363 = vmatpush.msra.mxu1 %v89_v47  ;;  %344 = vmatpush.msra.mxu0 %v55_v49  ;;  %v149_v54 = vld [vmem:[#allocation2 + $0x320] sm:$0xff] }
  0x21   :  { %v87_v51 = vld [vmem:[#allocation2 + $0x130] sm:$0xff]  ;;  %v85_v55 = vld [vmem:[#allocation2 + $0x120] sm:$0xff]  ;;  %404 = vmatpush.msra.mxu3 %v151_v50  ;;  %385 = vmatpush.msra.mxu2 %v117_v52 }
  0x22   :  { %364 = vmatpush.msra.mxu1 %v87_v51  ;;  %v115_v56 = vld [vmem:[#allocation2 + $0x210] sm:$0xff]  ;;  %345 = vmatpush.msra.mxu0 %v53_v53  ;;  %v113_v60 = vld [vmem:[#allocation2 + $0x200] sm:$0xff] }
  0x23   :  { %v51_v57 = vld [vmem:[#allocation2 + $0x10] sm:$0xff]  ;;  %405 = vmatpush.msra.mxu3 %v149_v54  ;;  %v49_v61 = vld [vmem:[#allocation2] sm:$0xff]  ;;  %386 = vmatpush.msra.mxu2 %v115_v56 }
  0x24   :  { %v147_v58 = vld [vmem:[#allocation2 + $0x310] sm:$0xff]  ;;  %365 = vmatpush.msra.mxu1 %v85_v55  ;;  %346 = vmatpush.msra.mxu0 %v51_v57  ;;  %v145_v63 = vld [vmem:[#allocation2 + $0x300] sm:$0xff] }
  0x25   :  { %v83_v59 = vld [vmem:[#allocation2 + $0x110] sm:$0xff]  ;;  %406 = vmatpush.msra.mxu3 %v147_v58  ;;  %387 = vmatpush.msra.mxu2 %v113_v60  ;;  %v269_v2 = vld [vmem:[#allocation2 + $0x6e0] sm:$0xff] }
  0x26   :  { %v271_v62 = vld [vmem:[#allocation2 + $0x6f0] sm:$0xff]  ;;  %366 = vmatpush.msra.mxu1 %v83_v59  ;;  %347 = vmatpush.msra.mxu0 %v49_v61  ;;  %v81_v3 = vld [vmem:[#allocation2 + $0x100] sm:$0xff] }
  0x27   :  { %v207_v0 = vld [vmem:[#allocation2 + $0x4f0] sm:$0xff]  ;;  %452 = vmatpush.msrb.mxu2 %v271_v62  ;;  %407 = vmatpush.msra.mxu3 %v145_v63  ;;  %v205_v4 = vld [vmem:[#allocation2 + $0x4e0] sm:$0xff] }
  0x28   :  { %v303_v1 = vld [vmem:[#allocation2 + $0x7f0] sm:$0xff]  ;;  %412 = vmatpush.msrb.mxu0 %v207_v0  ;;  %v301_v7 = vld [vmem:[#allocation2 + $0x7e0] sm:$0xff]  ;;  %367 = vmatpush.msra.mxu1 %v81_v3  ;;  %v926_v0 = vld.sshfl [vmem:[#allocation1 + $0x10] sm:$0xff pattern:$0x73625140] }
  0x29   :  { %v239_v5 = vld [vmem:[#allocation2 + $0x5f0] sm:$0xff]  ;;  %472 = vmatpush.msrb.mxu3 %v303_v1  ;;  %453 = vmatpush.msrb.mxu2 %v269_v2  ;;  %v237_v9 = vld [vmem:[#allocation2 + $0x5e0] sm:$0xff]  ;;  %v144_v2 = vld [vmem:[#allocation2 + $0x2f8] sm:$0xff] }
  0x2a   :  { %v267_v6 = vld [vmem:[#allocation2 + $0x6d0] sm:$0xff]  ;;  %413 = vmatpush.msrb.mxu0 %v205_v4  ;;  %432 = vmatpush.msrb.mxu1 %v239_v5  ;;  %v265_v10 = vld [vmem:[#allocation2 + $0x6c0] sm:$0xff]  ;;  %v928_v5 = vld.sshfl [vmem:[#allocation1] sm:$0xff pattern:$0x73625140] }
  0x2b   :  { %v203_v8 = vld [vmem:[#allocation2 + $0x4d0] sm:$0xff]  ;;  %454 = vmatpush.msrb.mxu2 %v267_v6  ;;  %473 = vmatpush.msrb.mxu3 %v301_v7  ;;  %v201_v12 = vld [vmem:[#allocation2 + $0x4c0] sm:$0xff]  ;;  %v80_v7 = vld [vmem:[#allocation2 + $0xf8] sm:$0xff] }
  0x2c   :  { %v299_v11 = vld [vmem:[#allocation2 + $0x7d0] sm:$0xff]  ;;  %414 = vmatpush.msrb.mxu0 %v203_v8  ;;  %433 = vmatpush.msrb.mxu1 %v237_v9  ;;  %v297_v15 = vld [vmem:[#allocation2 + $0x7c0] sm:$0xff]  ;;  %v142_v8 = vld [vmem:[#allocation2 + $0x2e8] sm:$0xff] }
  0x2d   :  { %v235_v13 = vld [vmem:[#allocation2 + $0x5d0] sm:$0xff]  ;;  %455 = vmatpush.msrb.mxu2 %v265_v10  ;;  %474 = vmatpush.msrb.mxu3 %v299_v11  ;;  %v233_v17 = vld [vmem:[#allocation2 + $0x5c0] sm:$0xff]  ;;  %v176_v9 = vld [vmem:[#allocation2 + $0x3f8] sm:$0xff] }
  0x2e   :  { %v263_v14 = vld [vmem:[#allocation2 + $0x6b0] sm:$0xff]  ;;  %415 = vmatpush.msrb.mxu0 %v201_v12  ;;  %434 = vmatpush.msrb.mxu1 %v235_v13  ;;  %v261_v18 = vld [vmem:[#allocation2 + $0x6a0] sm:$0xff]  ;;  %v78_v11 = vld [vmem:[#allocation2 + $0xe8] sm:$0xff] }
  0x2f   :  { %v199_v16 = vld [vmem:[#allocation2 + $0x4b0] sm:$0xff]  ;;  %456 = vmatpush.msrb.mxu2 %v263_v14  ;;  %475 = vmatpush.msrb.mxu3 %v297_v15  ;;  %v197_v20 = vld [vmem:[#allocation2 + $0x4a0] sm:$0xff]  ;;  %v140_v13 = vld [vmem:[#allocation2 + $0x2d8] sm:$0xff] }
  0x30   :  { %v295_v19 = vld [vmem:[#allocation2 + $0x7b0] sm:$0xff]  ;;  %416 = vmatpush.msrb.mxu0 %v199_v16  ;;  %435 = vmatpush.msrb.mxu1 %v233_v17  ;;  %v293_v23 = vld [vmem:[#allocation2 + $0x7a0] sm:$0xff]  ;;  %v112_v14 = vld [vmem:[#allocation2 + $0x1f8] sm:$0xff] }
  0x31   :  { %v231_v21 = vld [vmem:[#allocation2 + $0x5b0] sm:$0xff]  ;;  %457 = vmatpush.msrb.mxu2 %v261_v18  ;;  %476 = vmatpush.msrb.mxu3 %v295_v19  ;;  %v229_v26 = vld [vmem:[#allocation2 + $0x5a0] sm:$0xff]  ;;  %v174_v15 = vld [vmem:[#allocation2 + $0x3e8] sm:$0xff] }
  0x32   :  { %v259_v22 = vld [vmem:[#allocation2 + $0x690] sm:$0xff]  ;;  %417 = vmatpush.msrb.mxu0 %v197_v20  ;;  %436 = vmatpush.msrb.mxu1 %v231_v21  ;;  %v257_v27 = vld [vmem:[#allocation2 + $0x680] sm:$0xff]  ;;  %v76_v16 = vld [vmem:[#allocation2 + $0xd8] sm:$0xff] }
  0x33   :  { %v195_v25 = vld [vmem:[#allocation2 + $0x490] sm:$0xff]  ;;  %458 = vmatpush.msrb.mxu2 %v259_v22  ;;  %477 = vmatpush.msrb.mxu3 %v293_v23  ;;  %v193_v30 = vld [vmem:[#allocation2 + $0x480] sm:$0xff]  ;;  %v138_v17 = vld [vmem:[#allocation2 + $0x2c8] sm:$0xff] }
  0x34   :  { %v291_v28 = vld [vmem:[#allocation2 + $0x790] sm:$0xff]  ;;  %418 = vmatpush.msrb.mxu0 %v195_v25  ;;  %437 = vmatpush.msrb.mxu1 %v229_v26  ;;  %v289_v33 = vld [vmem:[#allocation2 + $0x780] sm:$0xff]  ;;  %v110_v18 = vld [vmem:[#allocation2 + $0x1e8] sm:$0xff] }
  0x35   :  { %v227_v31 = vld [vmem:[#allocation2 + $0x590] sm:$0xff]  ;;  %459 = vmatpush.msrb.mxu2 %v257_v27  ;;  %478 = vmatpush.msrb.mxu3 %v291_v28  ;;  %v225_v35 = vld [vmem:[#allocation2 + $0x580] sm:$0xff]  ;;  %v172_v19 = vld [vmem:[#allocation2 + $0x3d8] sm:$0xff] }
  0x36   :  { %v255_v32 = vld [vmem:[#allocation2 + $0x670] sm:$0xff]  ;;  %419 = vmatpush.msrb.mxu0 %v193_v30  ;;  %438 = vmatpush.msrb.mxu1 %v227_v31  ;;  %v253_v36 = vld [vmem:[#allocation2 + $0x660] sm:$0xff]  ;;  %v74_v21 = vld [vmem:[#allocation2 + $0xc8] sm:$0xff] }
  0x37   :  { %v191_v34 = vld [vmem:[#allocation2 + $0x470] sm:$0xff]  ;;  %v44_v38 = vld [vmem:[%s1093_s0 + $0x8] sm:$0xff]  ;;  %460 = vmatpush.msrb.mxu2 %v255_v32  ;;  %479 = vmatpush.msrb.mxu3 %v289_v33  ;;  %v108_v22 = vld [vmem:[#allocation2 + $0x1d8] sm:$0xff] }
  0x38   :  { %v287_v37 = vld [vmem:[#allocation2 + $0x770] sm:$0xff]  ;;  %v189_v39 = vld [vmem:[#allocation2 + $0x460] sm:$0xff]  ;;  %vm46_vm1 = vcmp.ne.f32.partialorder %v44_v38, %v44_v38  ;;  %420 = vmatpush.msrb.mxu0 %v191_v34  ;;  %439 = vmatpush.msrb.mxu1 %v225_v35  ;;  %v136_v23 = vld [vmem:[#allocation2 + $0x2b8] sm:$0xff] }
  0x39   :  { %v223_v40 = vld [vmem:[#allocation2 + $0x570] sm:$0xff]  ;;  %v285_v42 = vld [vmem:[#allocation2 + $0x760] sm:$0xff]  ;;  %v48_v43 = vsel %vm46_vm1, 0.0, %v44_v38  ;;  %461 = vmatpush.msrb.mxu2 %v253_v36  ;;  %480 = vmatpush.msrb.mxu3 %v287_v37  ;;  %v72_v27 = vld [vmem:[#allocation2 + $0xb8] sm:$0xff] }
  0x3a   :  { %v251_v41 = vld [vmem:[#allocation2 + $0x650] sm:$0xff]  ;;  %v221_v45 = vld [vmem:[#allocation2 + $0x560] sm:$0xff]  ;;  %315 = vst [vmem:[#allocation1 + $0x20] ss:$4 sm:$0xff] %v48_v43  ;;  %421 = vmatpush.msrb.mxu0 %v189_v39  ;;  %440 = vmatpush.msrb.mxu1 %v223_v40  ;;  %v106_v28 = vld [vmem:[#allocation2 + $0x1c8] sm:$0xff] }
  0x3b   :  { %v187_v44 = vld [vmem:[#allocation2 + $0x450] sm:$0xff]  ;;  %v249_v46 = vld [vmem:[#allocation2 + $0x640] sm:$0xff]  ;;  %462 = vmatpush.msrb.mxu2 %v251_v41  ;;  %481 = vmatpush.msrb.mxu3 %v285_v42  ;;  %v168_v30 = vld [vmem:[#allocation2 + $0x3b8] sm:$0xff] }
  0x3c   :  { %v283_v47 = vld [vmem:[#allocation2 + $0x750] sm:$0xff]  ;;  %v185_v48 = vld [vmem:[#allocation2 + $0x440] sm:$0xff]  ;;  %422 = vmatpush.msrb.mxu0 %v187_v44  ;;  %441 = vmatpush.msrb.mxu1 %v221_v45  ;;  %v70_v32 = vld [vmem:[#allocation2 + $0xa8] sm:$0xff] }
  0x3d   :  { %v219_v49 = vld [vmem:[#allocation2 + $0x550] sm:$0xff]  ;;  %v281_v51 = vld [vmem:[#allocation2 + $0x740] sm:$0xff]  ;;  %463 = vmatpush.msrb.mxu2 %v249_v46  ;;  %482 = vmatpush.msrb.mxu3 %v283_v47  ;;  %v104_v33 = vld [vmem:[#allocation2 + $0x1b8] sm:$0xff] }
  0x3e   :  { %v247_v50 = vld [vmem:[#allocation2 + $0x630] sm:$0xff]  ;;  %v217_v53 = vld [vmem:[#allocation2 + $0x540] sm:$0xff]  ;;  %423 = vmatpush.msrb.mxu0 %v185_v48  ;;  %442 = vmatpush.msrb.mxu1 %v219_v49  ;;  %v132_v34 = vld [vmem:[#allocation2 + $0x298] sm:$0xff] }
  0x3f   :  { %v183_v52 = vld [vmem:[#allocation2 + $0x430] sm:$0xff]  ;;  %v245_v54 = vld [vmem:[#allocation2 + $0x620] sm:$0xff]  ;;  %464 = vmatpush.msrb.mxu2 %v247_v50  ;;  %483 = vmatpush.msrb.mxu3 %v281_v51  ;;  %v166_v35 = vld [vmem:[#allocation2 + $0x3a8] sm:$0xff] }
  0x40   :  { %v279_v55 = vld [vmem:[#allocation2 + $0x730] sm:$0xff]  ;;  %v181_v56 = vld [vmem:[#allocation2 + $0x420] sm:$0xff]  ;;  %424 = vmatpush.msrb.mxu0 %v183_v52  ;;  %443 = vmatpush.msrb.mxu1 %v217_v53  ;;  %v68_v36 = vld [vmem:[#allocation2 + $0x98] sm:$0xff] }
  0x41   :  { %v215_v57 = vld [vmem:[#allocation2 + $0x530] sm:$0xff]  ;;  %v277_v59 = vld [vmem:[#allocation2 + $0x720] sm:$0xff]  ;;  %465 = vmatpush.msrb.mxu2 %v245_v54  ;;  %484 = vmatpush.msrb.mxu3 %v279_v55  ;;  %v938_v20 = vld.sshfl [vmem:[#allocation1 + $0x30] sm:$0xff pattern:$0x73625140] }
  0x42   :  { %v243_v58 = vld [vmem:[#allocation2 + $0x610] sm:$0xff]  ;;  %v213_v61 = vld [vmem:[#allocation2 + $0x520] sm:$0xff]  ;;  %425 = vmatpush.msrb.mxu0 %v181_v56  ;;  %444 = vmatpush.msrb.mxu1 %v215_v57  ;;  %v940_v25 = vld.sshfl [vmem:[#allocation1 + $0x20] sm:$0xff pattern:$0x73625140] }
  0x43   :  { %v179_v60 = vld [vmem:[#allocation2 + $0x410] sm:$0xff]  ;;  %v241_v62 = vld [vmem:[#allocation2 + $0x600] sm:$0xff]  ;;  %466 = vmatpush.msrb.mxu2 %v243_v58  ;;  %485 = vmatpush.msrb.mxu3 %v277_v59  ;;  %v102_v37 = vld [vmem:[#allocation2 + $0x1a8] sm:$0xff] }
  0x44   :  { %v275_v63 = vld [vmem:[#allocation2 + $0x710] sm:$0xff]  ;;  %v177_v1 = vld [vmem:[#allocation2 + $0x400] sm:$0xff]  ;;  %426 = vmatpush.msrb.mxu0 %v179_v60  ;;  %445 = vmatpush.msrb.mxu1 %v213_v61  ;;  %v130_v38 = vld [vmem:[#allocation2 + $0x288] sm:$0xff] }
  0x45   :  { %v211_v3 = vld [vmem:[#allocation2 + $0x510] sm:$0xff]  ;;  %467 = vmatpush.msrb.mxu2 %v241_v62  ;;  %486 = vmatpush.msrb.mxu3 %v275_v63  ;;  %v273_v4 = vld [vmem:[#allocation2 + $0x700] sm:$0xff]  ;;  %v164_v39 = vld [vmem:[#allocation2 + $0x398] sm:$0xff] }
  0x46   :  { %388 = vmatmul.f32.vlgmr.msra.gmra.mxu2 %v926_v0  ;;  %427 = vmatpush.msrb.mxu0 %v177_v1  ;;  %v931_v6 = vld.sshfl [vmem:[#allocation1 + $0x18] sm:$0xff pattern:$0x73625140]  ;;  %v209_v10 = vld [vmem:[#allocation2 + $0x500] sm:$0xff]  ;;  %v66_v40 = vld [vmem:[#allocation2 + $0x88] sm:$0xff] }
  0x47   :  { %532 = vmatpush.msra.mxu2 %v144_v2  ;;  %446 = vmatpush.msrb.mxu1 %v211_v3  ;;  %v935_v12 = vld.sshfl [vmem:[#allocation1 + $0x8] sm:$0xff pattern:$0x73625140]  ;;  %v943_v26 = vld.sshfl [vmem:[#allocation1 + $0x38] sm:$0xff pattern:$0x73625140] }
  0x48   :  { %487 = vmatpush.msrb.mxu3 %v273_v4  ;;  %348 = vmatmul.f32.vlgmr.msra.gmra.mxu0 %v928_v5  ;;  %v946_v31 = vld.sshfl [vmem:[#allocation1 + $0x28] sm:$0xff pattern:$0x73625140]  ;;  %v100_v41 = vld [vmem:[#allocation2 + $0x198] sm:$0xff]  ;;  %v162_v43 = vld [vmem:[#allocation2 + $0x388] sm:$0xff] }
  0x49   :  { %408 = vmatmul.f32.vlgmr.msra.gmra.mxu3 %v931_v6  ;;  %492 = vmatpush.msra.mxu0 %v80_v7  ;;  %v128_v42 = vld [vmem:[#allocation2 + $0x278] sm:$0xff]  ;;  %v98_v45 = vld [vmem:[#allocation2 + $0x188] sm:$0xff] }
  0x4a   :  { %533 = vmatpush.msra.mxu2 %v142_v8  ;;  %552 = vmatpush.msra.mxu3 %v176_v9  ;;  %v64_v44 = vld [vmem:[#allocation2 + $0x78] sm:$0xff]  ;;  %v126_v46 = vld [vmem:[#allocation2 + $0x268] sm:$0xff] }
  0x4b   :  { %447 = vmatpush.msrb.mxu1 %v209_v10  ;;  %493 = vmatpush.msra.mxu0 %v78_v11  ;;  %v160_v47 = vld [vmem:[#allocation2 + $0x378] sm:$0xff]  ;;  %v62_v48 = vld [vmem:[#allocation2 + $0x68] sm:$0xff] }
  0x4c   :  { %368 = vmatmul.f32.vlgmr.msra.gmra.mxu1 %v935_v12  ;;  %534 = vmatpush.msra.mxu2 %v140_v13  ;;  %v96_v49 = vld [vmem:[#allocation2 + $0x178] sm:$0xff]  ;;  %v158_v51 = vld [vmem:[#allocation2 + $0x368] sm:$0xff] }
  0x4d   :  { %512 = vmatpush.msra.mxu1 %v112_v14  ;;  %553 = vmatpush.msra.mxu3 %v174_v15  ;;  %v124_v50 = vld [vmem:[#allocation2 + $0x258] sm:$0xff]  ;;  %v94_v53 = vld [vmem:[#allocation2 + $0x168] sm:$0xff] }
  0x4e   :  { %494 = vmatpush.msra.mxu0 %v76_v16  ;;  %535 = vmatpush.msra.mxu2 %v138_v17  ;;  %v60_v52 = vld [vmem:[#allocation2 + $0x58] sm:$0xff]  ;;  %v122_v54 = vld [vmem:[#allocation2 + $0x248] sm:$0xff] }
  0x4f   :  { %513 = vmatpush.msra.mxu1 %v110_v18  ;;  %554 = vmatpush.msra.mxu3 %v172_v19  ;;  %v156_v55 = vld [vmem:[#allocation2 + $0x358] sm:$0xff]  ;;  %v58_v56 = vld [vmem:[#allocation2 + $0x48] sm:$0xff] }
  0x50   :  { %468 = vmatmul.f32.vlgmr.msrb.gmra.mxu2 %v938_v20  ;;  %495 = vmatpush.msra.mxu0 %v74_v21  ;;  %v92_v57 = vld [vmem:[#allocation2 + $0x158] sm:$0xff]  ;;  %v154_v59 = vld [vmem:[#allocation2 + $0x348] sm:$0xff] }
  0x51   :  { %514 = vmatpush.msra.mxu1 %v108_v22  ;;  %536 = vmatpush.msra.mxu2 %v136_v23  ;;  %v120_v58 = vld [vmem:[#allocation2 + $0x238] sm:$0xff]  ;;  %v90_v61 = vld [vmem:[#allocation2 + $0x148] sm:$0xff] }
  0x52   :  { %555 = vmatpush.msra.mxu3 %v170_v24  ;;  %428 = vmatmul.f32.vlgmr.msrb.gmra.mxu0 %v940_v25  ;;  %v56_v60 = vld [vmem:[#allocation2 + $0x38] sm:$0xff]  ;;  %v118_v62 = vld [vmem:[#allocation2 + $0x228] sm:$0xff] }
  0x53   :  { %488 = vmatmul.f32.vlgmr.msrb.gmra.mxu3 %v943_v26  ;;  %496 = vmatpush.msra.mxu0 %v72_v27  ;;  %v152_v63 = vld [vmem:[#allocation2 + $0x338] sm:$0xff]  ;;  %v54_v1 = vld [vmem:[#allocation2 + $0x28] sm:$0xff] }
  0x54   :  { %515 = vmatpush.msra.mxu1 %v106_v28  ;;  %537 = vmatpush.msra.mxu2 %v134_v29  ;;  %v88_v2 = vld [vmem:[#allocation2 + $0x138] sm:$0xff]  ;;  %v150_v4 = vld [vmem:[#allocation2 + $0x328] sm:$0xff] }
  0x55   :  { %556 = vmatpush.msra.mxu3 %v168_v30  ;;  %448 = vmatmul.f32.vlgmr.msrb.gmra.mxu1 %v946_v31  ;;  %v116_v3 = vld [vmem:[#allocation2 + $0x218] sm:$0xff]  ;;  %v86_v8 = vld [vmem:[#allocation2 + $0x128] sm:$0xff] }
  0x56   :  { %497 = vmatpush.msra.mxu0 %v70_v32  ;;  %516 = vmatpush.msra.mxu1 %v104_v33  ;;  %v52_v7 = vld [vmem:[#allocation2 + $0x18] sm:$0xff]  ;;  %v114_v9 = vld [vmem:[#allocation2 + $0x208] sm:$0xff] }
  0x57   :  { %538 = vmatpush.msra.mxu2 %v132_v34  ;;  %557 = vmatpush.msra.mxu3 %v166_v35  ;;  %v148_v10 = vld [vmem:[#allocation2 + $0x318] sm:$0xff]  ;;  %v50_v13 = vld [vmem:[#allocation2 + $0x8] sm:$0xff] }
  0x58   :  { %498 = vmatpush.msra.mxu0 %v68_v36  ;;  %517 = vmatpush.msra.mxu1 %v102_v37  ;;  %v272_v11 = vld [vmem:[#allocation2 + $0x6f8] sm:$0xff]  ;;  %v146_v15 = vld [vmem:[#allocation2 + $0x308] sm:$0xff] }
  0x59   :  { %539 = vmatpush.msra.mxu2 %v130_v38  ;;  %558 = vmatpush.msra.mxu3 %v164_v39  ;;  %v84_v14 = vld [vmem:[#allocation2 + $0x118] sm:$0xff]  ;;  %v270_v17 = vld [vmem:[#allocation2 + $0x6e8] sm:$0xff] }
  0x5a   :  { %499 = vmatpush.msra.mxu0 %v66_v40  ;;  %518 = vmatpush.msra.mxu1 %v100_v41  ;;  %v208_v16 = vld [vmem:[#allocation2 + $0x4f8] sm:$0xff]  ;;  %v82_v19 = vld [vmem:[#allocation2 + $0x108] sm:$0xff] }
  0x5b   :  { %540 = vmatpush.msra.mxu2 %v128_v42  ;;  %559 = vmatpush.msra.mxu3 %v162_v43  ;;  %v304_v18 = vld [vmem:[#allocation2 + $0x7f8] sm:$0xff]  ;;  %v206_v21 = vld [vmem:[#allocation2 + $0x4e8] sm:$0xff] }
  0x5c   :  { %500 = vmatpush.msra.mxu0 %v64_v44  ;;  %519 = vmatpush.msra.mxu1 %v98_v45  ;;  %v240_v22 = vld [vmem:[#allocation2 + $0x5f8] sm:$0xff]  ;;  %v302_v24 = vld [vmem:[#allocation2 + $0x7e8] sm:$0xff] }
  0x5d   :  { %541 = vmatpush.msra.mxu2 %v126_v46  ;;  %560 = vmatpush.msra.mxu3 %v160_v47  ;;  %v268_v23 = vld [vmem:[#allocation2 + $0x6d8] sm:$0xff]  ;;  %v238_v28 = vld [vmem:[#allocation2 + $0x5e8] sm:$0xff] }
  0x5e   :  { %501 = vmatpush.msra.mxu0 %v62_v48  ;;  %520 = vmatpush.msra.mxu1 %v96_v49  ;;  %v204_v27 = vld [vmem:[#allocation2 + $0x4d8] sm:$0xff]  ;;  %v266_v29 = vld [vmem:[#allocation2 + $0x6c8] sm:$0xff] }
  0x5f   :  { %542 = vmatpush.msra.mxu2 %v124_v50  ;;  %561 = vmatpush.msra.mxu3 %v158_v51  ;;  %v300_v30 = vld [vmem:[#allocation2 + $0x7d8] sm:$0xff]  ;;  %v202_v32 = vld [vmem:[#allocation2 + $0x4c8] sm:$0xff] }
  0x60   :  { %502 = vmatpush.msra.mxu0 %v60_v52  ;;  %521 = vmatpush.msra.mxu1 %v94_v53  ;;  %v236_v33 = vld [vmem:[#allocation2 + $0x5d8] sm:$0xff]  ;;  %v298_v35 = vld [vmem:[#allocation2 + $0x7c8] sm:$0xff] }
  0x61   :  { %543 = vmatpush.msra.mxu2 %v122_v54  ;;  %562 = vmatpush.msra.mxu3 %v156_v55  ;;  %v264_v34 = vld [vmem:[#allocation2 + $0x6b8] sm:$0xff]  ;;  %v234_v37 = vld [vmem:[#allocation2 + $0x5c8] sm:$0xff] }
  0x62   :  { %503 = vmatpush.msra.mxu0 %v58_v56  ;;  %522 = vmatpush.msra.mxu1 %v92_v57  ;;  %v200_v36 = vld [vmem:[#allocation2 + $0x4b8] sm:$0xff]  ;;  %v262_v38 = vld [vmem:[#allocation2 + $0x6a8] sm:$0xff] }
  0x63   :  { %544 = vmatpush.msra.mxu2 %v120_v58  ;;  %563 = vmatpush.msra.mxu3 %v154_v59  ;;  %v296_v39 = vld [vmem:[#allocation2 + $0x7b8] sm:$0xff]  ;;  %v198_v40 = vld [vmem:[#allocation2 + $0x4a8] sm:$0xff] }
  0x64   :  { %504 = vmatpush.msra.mxu0 %v56_v60  ;;  %523 = vmatpush.msra.mxu1 %v90_v61  ;;  %v232_v41 = vld [vmem:[#allocation2 + $0x5b8] sm:$0xff]  ;;  %v294_v43 = vld [vmem:[#allocation2 + $0x7a8] sm:$0xff] }
  0x65   :  { %545 = vmatpush.msra.mxu2 %v118_v62  ;;  %564 = vmatpush.msra.mxu3 %v152_v63  ;;  %v260_v42 = vld [vmem:[#allocation2 + $0x698] sm:$0xff]  ;;  %v230_v45 = vld [vmem:[#allocation2 + $0x5a8] sm:$0xff] }
  0x66   :  { %505 = vmatpush.msra.mxu0 %v54_v1  ;;  %524 = vmatpush.msra.mxu1 %v88_v2  ;;  %v196_v44 = vld [vmem:[#allocation2 + $0x498] sm:$0xff]  ;;  %v258_v46 = vld [vmem:[#allocation2 + $0x688] sm:$0xff] }
  0x67   :  { %546 = vmatpush.msra.mxu2 %v116_v3  ;;  %565 = vmatpush.msra.mxu3 %v150_v4  ;;  %v292_v47 = vld [vmem:[#allocation2 + $0x798] sm:$0xff]  ;;  %v194_v48 = vld [vmem:[#allocation2 + $0x488] sm:$0xff] }
  0x68   :  { %506 = vmatpush.msra.mxu0 %v52_v7  ;;  %525 = vmatpush.msra.mxu1 %v86_v8  ;;  %v228_v49 = vld [vmem:[#allocation2 + $0x598] sm:$0xff]  ;;  %v290_v51 = vld [vmem:[#allocation2 + $0x788] sm:$0xff] }
  0x69   :  { %547 = vmatpush.msra.mxu2 %v114_v9  ;;  %566 = vmatpush.msra.mxu3 %v148_v10  ;;  %v256_v50 = vld [vmem:[#allocation2 + $0x678] sm:$0xff]  ;;  %v226_v53 = vld [vmem:[#allocation2 + $0x588] sm:$0xff] }
  0x6a   :  { %507 = vmatpush.msra.mxu0 %v50_v13  ;;  %526 = vmatpush.msra.mxu1 %v84_v14  ;;  %v192_v52 = vld [vmem:[#allocation2 + $0x478] sm:$0xff]  ;;  %v254_v54 = vld [vmem:[#allocation2 + $0x668] sm:$0xff] }
  0x6b   :  { %612 = vmatpush.msrb.mxu2 %v272_v11  ;;  %567 = vmatpush.msra.mxu3 %v146_v15  ;;  %v288_v55 = vld [vmem:[#allocation2 + $0x778] sm:$0xff]  ;;  %v190_v56 = vld [vmem:[#allocation2 + $0x468] sm:$0xff] }
  0x6c   :  { %572 = vmatpush.msrb.mxu0 %v208_v16  ;;  %527 = vmatpush.msra.mxu1 %v82_v19  ;;  %v224_v57 = vld [vmem:[#allocation2 + $0x578] sm:$0xff]  ;;  %v286_v59 = vld [vmem:[#allocation2 + $0x768] sm:$0xff] }
  0x6d   :  { %613 = vmatpush.msrb.mxu2 %v270_v17  ;;  %632 = vmatpush.msrb.mxu3 %v304_v18  ;;  %v252_v58 = vld [vmem:[#allocation2 + $0x658] sm:$0xff]  ;;  %v222_v61 = vld [vmem:[#allocation2 + $0x568] sm:$0xff] }
  0x6e   :  { %573 = vmatpush.msrb.mxu0 %v206_v21  ;;  %592 = vmatpush.msrb.mxu1 %v240_v22  ;;  %v188_v60 = vld [vmem:[#allocation2 + $0x458] sm:$0xff]  ;;  %v250_v62 = vld [vmem:[#allocation2 + $0x648] sm:$0xff] }
  0x6f   :  { %614 = vmatpush.msrb.mxu2 %v268_v23  ;;  %633 = vmatpush.msrb.mxu3 %v302_v24  ;;  %v284_v63 = vld [vmem:[#allocation2 + $0x758] sm:$0xff]  ;;  %v186_v1 = vld [vmem:[#allocation2 + $0x448] sm:$0xff] }
  0x70   :  { %574 = vmatpush.msrb.mxu0 %v204_v27  ;;  %593 = vmatpush.msrb.mxu1 %v238_v28  ;;  %v220_v2 = vld [vmem:[#allocation2 + $0x558] sm:$0xff]  ;;  %v282_v4 = vld [vmem:[#allocation2 + $0x748] sm:$0xff]  ;;  %v661_v27 = vld [vmem:[%s1096_s3 + $0x38] sm:$0xff] }
  0x71   :  { %615 = vmatpush.msrb.mxu2 %v266_v29  ;;  %634 = vmatpush.msrb.mxu3 %v300_v30  ;;  %v248_v3 = vld [vmem:[#allocation2 + $0x638] sm:$0xff]  ;;  %v218_v8 = vld [vmem:[#allocation2 + $0x548] sm:$0xff]  ;;  %v659_v29 = vld [vmem:[%s1096_s3 + $0x28] sm:$0xff] }
  0x72   :  { %575 = vmatpush.msrb.mxu0 %v202_v32  ;;  %594 = vmatpush.msrb.mxu1 %v236_v33  ;;  %v184_v7 = vld [vmem:[#allocation2 + $0x438] sm:$0xff]  ;;  %v246_v9 = vld [vmem:[#allocation2 + $0x628] sm:$0xff]  ;;  %v657_v32 = vld [vmem:[%s1096_s3 + $0x18] sm:$0xff] }
  0x73   :  { %616 = vmatpush.msrb.mxu2 %v264_v34  ;;  %635 = vmatpush.msrb.mxu3 %v298_v35  ;;  %v280_v10 = vld [vmem:[#allocation2 + $0x738] sm:$0xff]  ;;  %v182_v11 = vld [vmem:[#allocation2 + $0x428] sm:$0xff]  ;;  %v655_v34 = vld [vmem:[%s1096_s3 + $0x8] sm:$0xff] }
  0x74   :  { %576 = vmatpush.msrb.mxu0 %v200_v36  ;;  %595 = vmatpush.msrb.mxu1 %v234_v37  ;;  %v216_v13 = vld [vmem:[#allocation2 + $0x538] sm:$0xff]  ;;  %v278_v15 = vld [vmem:[#allocation2 + $0x728] sm:$0xff]  ;;  %v685_v36 = vld [vmem:[%s1096_s3 + $0xf8] sm:$0xff] }
  0x75   :  { %617 = vmatpush.msrb.mxu2 %v262_v38  ;;  %636 = vmatpush.msrb.mxu3 %v296_v39  ;;  %v244_v14 = vld [vmem:[#allocation2 + $0x618] sm:$0xff]  ;;  %v214_v16 = vld [vmem:[#allocation2 + $0x528] sm:$0xff]  ;;  %v683_v38 = vld [vmem:[%s1096_s3 + $0xe8] sm:$0xff] }
  0x76   :  { %577 = vmatpush.msrb.mxu0 %v198_v40  ;;  %596 = vmatpush.msrb.mxu1 %v232_v41  ;;  %v242_v17 = vld [vmem:[#allocation2 + $0x608] sm:$0xff]  ;;  %v276_v18 = vld [vmem:[#allocation2 + $0x718] sm:$0xff]  ;;  %v681_v41 = vld [vmem:[%s1096_s3 + $0xd8] sm:$0xff] }
  0x77   :  { %618 = vmatpush.msrb.mxu2 %v260_v42  ;;  %637 = vmatpush.msrb.mxu3 %v294_v43  ;;  %v274_v19 = vld [vmem:[#allocation2 + $0x708] sm:$0xff]  ;;  %v666_v23 = vld [vmem:[%s1096_s3 + $0x60] sm:$0xff] }
  0x78   :  { %578 = vmatpush.msrb.mxu0 %v196_v44  ;;  %597 = vmatpush.msrb.mxu1 %v230_v45  ;;  %v210_v21 = vld [vmem:[#allocation2 + $0x508] sm:$0xff]  ;;  %v662_v24 = vld [vmem:[%s1096_s3 + $0x40] sm:$0xff] }
  0x79   :  { %619 = vmatpush.msrb.mxu2 %v258_v46  ;;  %638 = vmatpush.msrb.mxu3 %v292_v47  ;;  %v668_v22 = vld [vmem:[%s1096_s3 + $0x70] sm:$0xff]  ;;  %v658_v30 = vld [vmem:[%s1096_s3 + $0x20] sm:$0xff] }
  0x7a   :  { %579 = vmatpush.msrb.mxu0 %v194_v48  ;;  %598 = vmatpush.msrb.mxu1 %v228_v49  ;;  %v660_v28 = vld [vmem:[%s1096_s3 + $0x30] sm:$0xff]  ;;  %v654_v35 = vld [vmem:[%s1096_s3] sm:$0xff] }
  0x7b   :  { %620 = vmatpush.msrb.mxu2 %v256_v50  ;;  %639 = vmatpush.msrb.mxu3 %v290_v51  ;;  %v656_v33 = vld [vmem:[%s1096_s3 + $0x10] sm:$0xff]  ;;  %v305_v39 = vld [vmem:[%s1095_s2] sm:$0x3] }
  0x7c   :  { %580 = vmatpush.msrb.mxu0 %v192_v52  ;;  %599 = vmatpush.msrb.mxu1 %v226_v53  ;;  %v684_v37 = vld [vmem:[%s1096_s3 + $0xf0] sm:$0xff]  ;;  %v682_v40 = vld [vmem:[%s1096_s3 + $0xe0] sm:$0xff]  ;;  %v307_v42 = vperm.slane %v305_v39, 0 }
  0x7d   :  { %621 = vmatpush.msrb.mxu2 %v254_v54  ;;  %640 = vmatpush.msrb.mxu3 %v288_v55  ;;  %v680_v43 = vld [vmem:[%s1096_s3 + $0xd0] sm:$0xff] }
  0x7e   :  { %581 = vmatpush.msrb.mxu0 %v190_v56  ;;  %600 = vmatpush.msrb.mxu1 %v224_v57 }
  0x7f   :  { %622 = vmatpush.msrb.mxu2 %v252_v58  ;;  %641 = vmatpush.msrb.mxu3 %v286_v59 }
  0x80   :  { %582 = vmatpush.msrb.mxu0 %v188_v60  ;;  %601 = vmatpush.msrb.mxu1 %v222_v61  ;;  %v679_v61 = vld [vmem:[%s1096_s3 + $0xc8] sm:$0xff] }
  0x81   :  { %623 = vmatpush.msrb.mxu2 %v250_v62  ;;  %642 = vmatpush.msrb.mxu3 %v284_v63  ;;  %v678_v62 = vld [vmem:[%s1096_s3 + $0xc0] sm:$0xff]  ;;  %v677_v63 = vld [vmem:[%s1096_s3 + $0xb8] sm:$0xff] }
  0x82   :  { %548 = vmatmul.f32.vlgmr.msra.gmra.mxu2 %v926_v0  ;;  %583 = vmatpush.msrb.mxu0 %v186_v1  ;;  %v180_v0 = vld [vmem:[#allocation2 + $0x418] sm:$0xff]  ;;  %v676_v1 = vld [vmem:[%s1096_s3 + $0xb0] sm:$0xff] }
  0x83   :  { %602 = vmatpush.msrb.mxu1 %v220_v2  ;;  %624 = vmatpush.msrb.mxu2 %v248_v3  ;;  %v675_v2 = vld [vmem:[%s1096_s3 + $0xa8] sm:$0xff]  ;;  %v674_v3 = vld [vmem:[%s1096_s3 + $0xa0] sm:$0xff] }
  0x84   :  { %643 = vmatpush.msrb.mxu3 %v282_v4  ;;  %508 = vmatmul.f32.vlgmr.msra.gmra.mxu0 %v928_v5  ;;  %v178_v5 = vld [vmem:[#allocation2 + $0x408] sm:$0xff]  ;;  %v673_v4 = vld [vmem:[%s1096_s3 + $0x98] sm:$0xff] }
  0x85   :  { %568 = vmatmul.f32.vlgmr.msra.gmra.mxu3 %v931_v6  ;;  %584 = vmatpush.msrb.mxu0 %v184_v7  ;;  %v212_v6 = vld [vmem:[#allocation2 + $0x518] sm:$0xff]  ;;  %v672_v7 = vld [vmem:[%s1096_s3 + $0x90] sm:$0xff] }
  0x86   :  { %603 = vmatpush.msrb.mxu1 %v218_v8  ;;  %625 = vmatpush.msrb.mxu2 %v246_v9  ;;  %v671_v8 = vld [vmem:[%s1096_s3 + $0x88] sm:$0xff]  ;;  %v670_v9 = vld [vmem:[%s1096_s3 + $0x80] sm:$0xff] }
  0x87   :  { %644 = vmatpush.msrb.mxu3 %v280_v10  ;;  %528 = vmatmul.f32.vlgmr.msra.gmra.mxu1 %v935_v12  ;;  %v669_v12 = vld [vmem:[%s1096_s3 + $0x78] sm:$0xff]  ;;  %v308_v10 = vperm.slane %v305_v39, 1  ;;  %v816_v39 = vld [vmem:[%s1099_s6] ss:$0 sm:$0xff] }
  0x88   :  { %585 = vmatpush.msrb.mxu0 %v182_v11  ;;  %604 = vmatpush.msrb.mxu1 %v216_v13 }
  0x89   :  { %626 = vmatpush.msrb.mxu2 %v244_v14  ;;  %645 = vmatpush.msrb.mxu3 %v278_v15 }
  0x8a   :  { %586 = vmatpush.msrb.mxu0 %v180_v0  ;;  %605 = vmatpush.msrb.mxu1 %v214_v16 }
  0x8b   :  { %627 = vmatpush.msrb.mxu2 %v242_v17  ;;  %646 = vmatpush.msrb.mxu3 %v276_v18 }
  0x8c   :  { %628 = vmatmul.f32.vlgmr.msrb.gmra.mxu2 %v938_v20  ;;  %587 = vmatpush.msrb.mxu0 %v178_v5  ;;  %v667_v20 = vld [vmem:[%s1096_s3 + $0x68] sm:$0xff] }
  0x8d   :  { %606 = vmatpush.msrb.mxu1 %v212_v6  ;;  %647 = vmatpush.msrb.mxu3 %v274_v19 }
  0x8e   :  { %588 = vmatmul.f32.vlgmr.msrb.gmra.mxu0 %v940_v25  ;;  %648 = vmatmul.f32.vlgmr.msrb.gmra.mxu3 %v943_v26  ;;  %v665_v25 = vld [vmem:[%s1096_s3 + $0x58] sm:$0xff]  ;;  %v664_v26 = vld [vmem:[%s1096_s3 + $0x50] sm:$0xff] }
  0x8f   :  { %607 = vmatpush.msrb.mxu1 %v210_v21  ;;  %690 = vmatpush.msra.mxu0 %v669_v12 }
  0x90   :  { %608 = vmatmul.f32.vlgmr.msrb.gmra.mxu1 %v946_v31  ;;  %v663_v31 = vld [vmem:[%s1096_s3 + $0x48] sm:$0xff] }
  0x91   :  { %691 = vmatpush.msra.mxu0 %v668_v22  ;;  %710 = vmatpush.msra.mxu1 %v685_v36 }
  0x93   :  { %692 = vmatpush.msra.mxu0 %v667_v20  ;;  %711 = vmatpush.msra.mxu1 %v684_v37 }
  0x95   :  { %693 = vmatpush.msra.mxu0 %v666_v23  ;;  %712 = vmatpush.msra.mxu1 %v683_v38 }
  0x97   :  { %694 = vmatpush.msra.mxu0 %v665_v25  ;;  %713 = vmatpush.msra.mxu1 %v682_v40 }
  0x99   :  { %695 = vmatpush.msra.mxu0 %v664_v26  ;;  %714 = vmatpush.msra.mxu1 %v681_v41  ;;  %v738_v26 = vld [vmem:[%s1098_s5 + $0x38] sm:$0xff] }
  0x9a   :  { %755 = vmatpush.msra.mxu2 %v738_v26 }
  0x9b   :  { %696 = vmatpush.msra.mxu0 %v663_v31  ;;  %715 = vmatpush.msra.mxu1 %v680_v43  ;;  %v737_v31 = vld [vmem:[%s1098_s5 + $0x30] sm:$0xff] }
  0x9c   :  { %756 = vmatpush.msra.mxu2 %v737_v31 }
  0x9d   :  { %697 = vmatpush.msra.mxu0 %v662_v24  ;;  %716 = vmatpush.msra.mxu1 %v679_v61  ;;  %v736_v24 = vld [vmem:[%s1098_s5 + $0x28] sm:$0xff] }
  0x9e   :  { %757 = vmatpush.msra.mxu2 %v736_v24 }
  0x9f   :  { %698 = vmatpush.msra.mxu0 %v661_v27  ;;  %717 = vmatpush.msra.mxu1 %v678_v62  ;;  %v735_v27 = vld [vmem:[%s1098_s5 + $0x20] sm:$0xff] }
  0xa0   :  { %758 = vmatpush.msra.mxu2 %v735_v27 }
  0xa1   :  { %699 = vmatpush.msra.mxu0 %v660_v28  ;;  %718 = vmatpush.msra.mxu1 %v677_v63  ;;  %v734_v28 = vld [vmem:[%s1098_s5 + $0x18] sm:$0xff] }
  0xa2   :  { %759 = vmatpush.msra.mxu2 %v734_v28 }
  0xa3   :  { %700 = vmatpush.msra.mxu0 %v659_v29  ;;  %719 = vmatpush.msra.mxu1 %v676_v1  ;;  %v733_v29 = vld [vmem:[%s1098_s5 + $0x10] sm:$0xff] }
  0xa4   :  { %760 = vmatpush.msra.mxu2 %v733_v29 }
  0xa5   :  { %701 = vmatpush.msra.mxu0 %v658_v30  ;;  %720 = vmatpush.msra.mxu1 %v675_v2  ;;  %v732_v30 = vld [vmem:[%s1098_s5 + $0x8] sm:$0xff] }
  0xa6   :  { %761 = vmatpush.msra.mxu2 %v732_v30 }
  0xa7   :  { %702 = vmatpush.msra.mxu0 %v657_v32  ;;  %721 = vmatpush.msra.mxu1 %v674_v3  ;;  %v731_v32 = vld [vmem:[%s1098_s5] sm:$0xff] }
  0xa8   :  { %762 = vmatpush.msra.mxu2 %v731_v32 }
  0xa9   :  { %703 = vmatpush.msra.mxu0 %v656_v33  ;;  %722 = vmatpush.msra.mxu1 %v673_v4  ;;  %v815_v33 = vld [vmem:[%s1097_s4] ss:$0 sm:$0xff]  ;;  %s876_s4 = smov [#allocation5]  }
  0xaa   :  { %s798_s5 = sshll.u32 %s876_s4, 4  ;;  %s799_s5 = int_to_ptr.vmem [resolvable:$true] %s798_s5 }
  0xab   :  { %704 = vmatpush.msra.mxu0 %v655_v34  ;;  %723 = vmatpush.msra.mxu1 %v672_v7 }
  0xad   :  { %705 = vmatpush.msra.mxu0 %v654_v35  ;;  %724 = vmatpush.msra.mxu1 %v671_v8 }
  0xaf   :  { %725 = vmatpush.msra.mxu1 %v670_v9 }
  0xc5   :  { %v349_v44 = vpop.f32.mrf.mxu0 }
  0xc6   :  { %v350_v45 = vadd.f32 %v349_v44, %v307_v42 }
  0xc9   :  { %v369_v46 = vpop.f32.mrf.mxu1  ;;  %v389_v47 = vpop.f32.mrf.mxu2 }
  0xca   :  { %v370_v48 = vadd.f32 %v369_v46, %v350_v45 }
  0xcc   :  { %v390_v49 = vadd.f32 %v389_v47, %v370_v48  ;;  %v409_v50 = vpop.f32.mrf.mxu3 }
  0xce   :  { %v410_v51 = vadd.f32 %v409_v50, %v390_v49 }
  0xcf   :  { %v429_v52 = vpop.f32.mrf.mxu0 }
  0xd0   :  { %v430_v53 = vadd.f32 %v429_v52, %v410_v51 }
  0xd2   :  { %v449_v54 = vpop.f32.mrf.mxu1 }
  0xd3   :  { %v450_v55 = vadd.f32 %v449_v54, %v430_v53  ;;  %v469_v56 = vpop.f32.mrf.mxu2 }
  0xd5   :  { %v470_v57 = vadd.f32 %v469_v56, %v450_v55 }
  0xd6   :  { %v489_v58 = vpop.f32.mrf.mxu3 }
  0xd7   :  { %v490_v59 = vadd.f32 %v489_v58, %v470_v57 }
  0xd9   :  { %v652_v60 = vmax.f32 %v490_v59, 0.0 }
  0xdb   :  { %706 = vmatmul.f32.vlgmr.msra.gmra.mxu0 %v652_v60 }
 0x101   :  { %v509_v11 = vpop.f32.mrf.mxu0 }
 0x102   :  { %v510_v13 = vadd.f32 %v509_v11, %v308_v10 }
 0x104   :  { %v529_v14 = vpop.f32.mrf.mxu1 }
 0x105   :  { %v530_v15 = vadd.f32 %v529_v14, %v510_v13  ;;  %v549_v0 = vpop.f32.mrf.mxu2 }
 0x107   :  { %v550_v16 = vadd.f32 %v549_v0, %v530_v15 }
 0x108   :  { %v569_v17 = vpop.f32.mrf.mxu3 }
 0x109   :  { %v570_v18 = vadd.f32 %v569_v17, %v550_v16 }
 0x10b   :  { %v589_v5 = vpop.f32.mrf.mxu0 }
 0x10c   :  { %v590_v6 = vadd.f32 %v589_v5, %v570_v18 }
 0x10d   :  { %v609_v19 = vpop.f32.mrf.mxu1 }
 0x10e   :  { %v610_v21 = vadd.f32 %v609_v19, %v590_v6 }
 0x10f   :  { %v629_v12 = vpop.f32.mrf.mxu2 }
 0x110   :  { %v630_v22 = vadd.f32 %v629_v12, %v610_v21 }
 0x111   :  { %v649_v20 = vpop.f32.mrf.mxu3 }
 0x112   :  { %v650_v23 = vadd.f32 %v649_v20, %v630_v22 }
 0x114   :  { %v653_v25 = vmax.f32 %v650_v23, 0.0 }
 0x116   :  { %726 = vmatmul.f32.vlgmr.msra.gmra.mxu1 %v653_v25 }
 0x158   :  { %v707_v34 = vpop.f32.mrf.mxu0 }
 0x159   :  { %v708_v35 = vadd.f32 %v815_v33, %v707_v34 }
 0x193   :  { %v727_v36 = vpop.f32.mrf.mxu1 }
 0x194   :  { %v728_v37 = vadd.f32 %v727_v36, %v708_v35 }
 0x196   :  { %v730_v38 = vmax.f32 %v728_v37, 0.0 }
 0x198   :  { %810 = vmatmul.msk.f32.vlgmr.msra.gmra.mxu2 %vm743_vm2, %v730_v38 }
 0x21b   :  { %v764_v40 = vpop.f32.mrf.mxu2 }
 0x21c   :  { %v765_v41 = vadd.f32 %v816_v39, %v764_v40 }
 0x21e   :  { %v768_v42 = vsel %vm767_vm3, %v765_v41, -inf }
 0x21f   :  { %769 = vmax.xlane.f32.xlu0 %v768_v42 }
 0x292   :  { %v770_v43 = vpop.xlane.xlu0 %769 }
 0x293   :  { %v771_v44 = vsub.f32 %v765_v41, %v770_v43 }
 0x295   :  { %v772_v45 = vmul.f32 1.442695, %v771_v44 }
 0x297   :  { %817 = vpow2.f32 %v772_v45 }
 0x29d   :  { %v818_v46 = vpop.eup %817 }
 0x29e   :  { %v774_v47 = vsel %vm767_vm3, %v818_v46, 0.0 }
 0x29f   :  { %775 = vadd.xlane.f32.xlu0 %v774_v47 }
 0x312   :  { %v776_v48 = vpop.xlane.xlu0 %775 }
 0x313   :  { %819 = vrcp.f32 %v776_v48  ;;  %v788_v52 = vand.u32 2147483648, %v776_v48  ;;  %v786_v54 = vand.u32 2147483647, %v776_v48  ;;  %vm782_vm5 = vweird.f32 %v776_v48 }
 0x315   :  { %v789_v56 = vor.u32 1.1754944e-38, %v788_v52  ;;  %vm787_vm7 = vcmp.eq.f32.partialorder %v786_v54, 8.507059e+37 }
 0x319   :  { %v820_v49 = vpop.eup %819 }
 0x31a   :  { %v778_v50 = vmul.f32 %v820_v49, %v776_v48  ;;  %vm783_vm4 = vweird.f32 %v820_v49 }
 0x31b   :  { %vm784_vm6 = vmor %vm782_vm5, %vm783_vm4 }
 0x31c   :  { %v779_v51 = vsub.f32 1.0, %v778_v50 }
 0x31e   :  { %v780_v53 = vmul.f32 %v820_v49, %v779_v51 }
 0x320   :  { %v781_v55 = vadd.f32 %v820_v49, %v780_v53 }
 0x322   :  { %v785_v57 = vsel %vm784_vm6, %v820_v49, %v781_v55 }
 0x323   :  { %v790_v58 = vsel %vm787_vm7, %v789_v56, %v785_v57 }
 0x324   :  { %v791_v59 = vmul.f32 %v818_v46, %v790_v58 }
 0x326   :  { %792 = vst.msk [vmem:[#allocation5] sm:$0x3] %vm767_vm3, %v791_v59 }
 0x327   :  { %803 = dma.vmem_to_hbm [thread:$0]  %s799_s5, 32, %s801_s19, [#allocation4]  }
 0x328   :  { %871 = dma.done.wait [#allocation4], 32  }
 0x329   :  { %872 = vsyncadd [#allocation4], 4294967264 }
 0x32a   :  { %808 = vsyncpa [#allocation3], 1 }
 0x32b   :  { %809 = vsyncpa [#allocation4], 1 }

</bundles_post_ra>
